<compile_context>
chip_gen: v5e
topology: v5e:2x2
jax: 0.10.0
libtpu: 0.0.40
codegen_flags: <defaults>
</compile_context>

<pallas_src>
import functools

import jax
import jax.numpy as jnp
from jax.experimental import pallas as pl
from jax.experimental.pallas import tpu as pltpu

LANE = 128      # TPU lane width: output feature dim padded to this for dense stores
SUBLANE = 8     # f32 sublane count per vreg: row tiles are multiples of this
IN_FEATURES = 16
OUT_FEATURES = 32


def _linear_leakyrelu_kernel(x_ref, w_ref, b_ref, o_ref):
    # x_ref: (TM, 16) f32   w_ref: (16, 128) bf16   b_ref: (1, 128) f32
    # o_ref: (TM, 128) f32
    x = x_ref[...].astype(jnp.bfloat16)              # single-pass bf16 MXU matmul
    y = jnp.dot(x, w_ref[...], preferred_element_type=jnp.float32)
    y = y + b_ref[...]
    # v2 = y > 0 ; v3 = 0.01 * y ; v4 = where(v2, y, v3)  -- fused epilogue
    o_ref[...] = jnp.where(y > 0.0, y, y * 0.01).astype(o_ref.dtype)


def prepare_params(w_pt, b):
    """Convert PyTorch-layout params once and keep them resident.

    w_pt: (out_features, in_features)  -- exactly nn.Linear.weight layout
    b:    (out_features,)
    Returns (w_padded: (in, 128-pad) bf16, b_padded: (1, 128-pad) f32, out_features).
    """
    out_features, in_features = w_pt.shape
    n_pad = ((out_features + LANE - 1) // LANE) * LANE
    w_padded = (
        jnp.zeros((in_features, n_pad), jnp.bfloat16)
        .at[:, :out_features]
        .set(w_pt.T.astype(jnp.bfloat16))
    )
    b_padded = (
        jnp.zeros((1, n_pad), jnp.float32)
        .at[0, :out_features]
        .set(b.astype(jnp.float32))
    )
    return w_padded, b_padded, out_features


@functools.partial(jax.jit, static_argnames=("out_features", "tm"))
def linear_leakyrelu(x, w_padded, b_padded, *, out_features, tm=None):
    """x: (M, 16) f32. Returns (M, out_features) = LeakyReLU_0.01(x @ W^T + b)."""
    m, k = x.shape
    n_pad = w_padded.shape[1]

    if tm is None:
        # Multiple of 8 sublanes.  Real batches get a large tile (amortizes the
        # ~0.35 us/step pipeline overhead); M=1 pads to one full sublane tile.
        # TM=512 keeps double-buffered x+out well under v7x's 64 MiB VMEM.
        tm = min(512, ((m + SUBLANE - 1) // SUBLANE) * SUBLANE)
    m_pad = ((m + tm - 1) // tm) * tm
    x_p = x if m_pad == m else jnp.zeros((m_pad, k), x.dtype).at[:m].set(x)

    out = pl.pallas_call(
        _linear_leakyrelu_kernel,
        out_shape=jax.ShapeDtypeStruct((m_pad, n_pad), jnp.float32),
        grid_spec=pltpu.PrefetchScalarGridSpec(
            num_scalar_prefetch=0,
            grid=(m_pad // tm,),
            in_specs=[
                pl.BlockSpec((tm, k), lambda i: (i, 0)),       # row tiles stream
                pl.BlockSpec((k, n_pad), lambda i: (0, 0)),    # weights VMEM-resident
                pl.BlockSpec((1, n_pad), lambda i: (0, 0)),    # bias VMEM-resident
            ],
            out_specs=pl.BlockSpec((tm, n_pad), lambda i: (i, 0)),
        ),
        compiler_params=pltpu.CompilerParams(
            dimension_semantics=("parallel",),   # v7x: shard row tiles across both TCs
        ),
    )(x_p, w_padded, b_padded)

    return out[:m, :out_features]                # drop row + lane padding


def reference(x1, w_pt, b):
    y = x1.reshape(-1) @ w_pt.T + b
    return jnp.where(y > 0, y, y * 0.01)


if __name__ == "__main__":
    key = jax.random.PRNGKey(0)
    k_x, k_w, k_b = jax.random.split(key, 3)

    # Deterministic "PyTorch-like" init: uniform(-1/sqrt(in), 1/sqrt(in)),
    # weight kept in PyTorch (out, in) layout to exercise the conversion path.
    bound = 1.0 / (IN_FEATURES ** 0.5)
    w_pt = jax.random.uniform(k_w, (OUT_FEATURES, IN_FEATURES), jnp.float32,
                              minval=-bound, maxval=bound)
    b = jax.random.uniform(k_b, (OUT_FEATURES,), jnp.float32,
                           minval=-bound, maxval=bound)

    # Module input: x1 = torch.randn(1, 16)
    x1 = jax.random.normal(k_x, (1, IN_FEATURES), jnp.float32)

    # One-time param conversion (resident bf16 weights across calls).
    w_padded, b_padded, n_out = prepare_params(w_pt, b)

    # x1.flatten(-2) turns (1, 16) into a single 16-vector -> one row for the kernel.
    x_rows = x1.reshape(1, IN_FEATURES)
    out_rows = linear_leakyrelu(x_rows, w_padded, b_padded, out_features=n_out)
    out = out_rows.reshape(-1)                   # (32,), matching PyTorch's 1-D output
    jax.block_until_ready(out)

    ref = reference(x1, w_pt, b)
    assert out.shape == (OUT_FEATURES,)
    # bf16 weights/activations with f32 accumulation at K=16: loosen tolerance.
    assert jnp.allclose(out, ref, atol=5e-2, rtol=5e-2), float(
        jnp.max(jnp.abs(out - ref)))

    print("KERNEL_OK")
</pallas_src>

<mosaic_0001>
module attributes {stable_mosaic.version = 11 : i64} {
  func.func @_linear_leakyrelu_kernel(%arg0: i32, %arg1: memref<8x16xf32, #tpu.memory_space<vmem>>, %arg2: memref<16x128xbf16, #tpu.memory_space<vmem>>, %arg3: memref<1x128xf32, #tpu.memory_space<vmem>>, %arg4: memref<8x128xf32, #tpu.memory_space<vmem>>) attributes {dimension_semantics = [#tpu.dimension_semantics<parallel>], iteration_bounds = array<i64: 1>, scalar_prefetch = 0 : i64, scratch_operands = 0 : i64, tpu.core_type = #tpu.core_type<tc>, window_params = [{transform_indices = @transform_0, window_bounds = array<i64: 8, 16>}, {pipeline_mode = #tpu.pipeline_mode<synchronous>, transform_indices = @transform_1, window_bounds = array<i64: 16, 128>}, {pipeline_mode = #tpu.pipeline_mode<synchronous>, transform_indices = @transform_2, window_bounds = array<i64: 1, 128>}, {transform_indices = @transform_3, window_bounds = array<i64: 8, 128>}]} {
    %c0 = arith.constant 0 : index
    %c0_0 = arith.constant 0 : index
    %0 = vector.load %arg1[%c0, %c0_0] : memref<8x16xf32, #tpu.memory_space<vmem>>, vector<8x16xf32>
    %1 = arith.truncf %0 : vector<8x16xf32> to vector<8x16xbf16>
    %c0_1 = arith.constant 0 : index
    %c0_2 = arith.constant 0 : index
    %2 = vector.load %arg2[%c0_1, %c0_2] : memref<16x128xbf16, #tpu.memory_space<vmem>>, vector<16x128xbf16>
    %cst = arith.constant dense<0.000000e+00> : vector<8x128xf32>
    %3 = tpu.matmul %1, %2, %cst {dimension_numbers = #tpu.dot_dimension_numbers<[1], [0], [0], [1], [0, 0, 1, 1], [], []>} : vector<8x16xbf16>, vector<16x128xbf16>, vector<8x128xf32> -> vector<8x128xf32>
    %c0_3 = arith.constant 0 : index
    %c0_4 = arith.constant 0 : index
    %4 = vector.load %arg3[%c0_3, %c0_4] : memref<1x128xf32, #tpu.memory_space<vmem>>, vector<1x128xf32>
    %5 = vector.broadcast %4 : vector<1x128xf32> to vector<8x128xf32>
    %6 = arith.addf %3, %5 : vector<8x128xf32>
    %cst_5 = arith.constant 0.000000e+00 : f32
    %7 = vector.broadcast %cst_5 : f32 to vector<8x128xf32>
    %8 = arith.cmpf ogt, %6, %7 : vector<8x128xf32>
    %cst_6 = arith.constant 0.00999999977 : f32
    %9 = vector.broadcast %cst_6 : f32 to vector<8x128xf32>
    %10 = arith.mulf %6, %9 : vector<8x128xf32>
    %11 = arith.select %8, %6, %10 : vector<8x128xi1>, vector<8x128xf32>
    %c0_7 = arith.constant 0 : index
    %c0_8 = arith.constant 0 : index
    %12 = vector.load %arg4[%c0_7, %c0_8] : memref<8x128xf32, #tpu.memory_space<vmem>>, vector<8x128xf32>
    tpu.vector_store %arg4[%c0_7, %c0_8], %11 {strides = array<i32>} : memref<8x128xf32, #tpu.memory_space<vmem>>, vector<8x128xf32>,
    return
  }
  func.func @transform_0(%arg0: i32) -> (i32, i32) {
    %c0_i32 = arith.constant 0 : i32
    %c0_i32_0 = arith.constant 0 : i32
    return %arg0, %c0_i32 : i32, i32
  }
  func.func @transform_1(%arg0: i32) -> (i32, i32) {
    %c0_i32 = arith.constant 0 : i32
    %c0_i32_0 = arith.constant 0 : i32
    %c0_i32_1 = arith.constant 0 : i32
    return %c0_i32, %c0_i32_0 : i32, i32
  }
  func.func @transform_2(%arg0: i32) -> (i32, i32) {
    %c0_i32 = arith.constant 0 : i32
    %c0_i32_0 = arith.constant 0 : i32
    %c0_i32_1 = arith.constant 0 : i32
    return %c0_i32, %c0_i32_0 : i32, i32
  }
  func.func @transform_3(%arg0: i32) -> (i32, i32) {
    %c0_i32 = arith.constant 0 : i32
    %c0_i32_0 = arith.constant 0 : i32
    return %arg0, %c0_i32 : i32, i32
  }
}

</mosaic_0001>

<bundles_post_ra>
// kernel: linear_leakyrelu.1
= control target key start
LH: loop header
LB: loop body
LE: loop exit
PB: predicated region body
PF: predicated region fallthrough
CT: control target
= control target key end

     0   :  { %vm29_vm0 = vcmask 130048   ;;  %s93_s1 = inlined_call_operand.vmem [shape: bf16[16,128], index: 1, kind: input, shape index: {}]   ;;  %s94_s0 = inlined_call_operand.vmem [shape: f32[8,16], index: 0, kind: input, shape index: {}]   ;;  %s95_s2 = inlined_call_operand.vmem [shape: f32[1,128], index: 2, kind: input, shape index: {}]   ;;  %s96_s3 = inlined_call_operand.vmem [shape: f32[8,128], index: 3, kind: output, shape index: {}]  }
   0x1   :  { %v59_v0 = vld [vmem:[%s93_s1] sm:$0xff] }
   0x2   :  { %v15_v1 = vld [vmem:[%s94_s0] sm:$0xff]  ;;  %40 = vmatpush.bf16.msra.mxu0 %v59_v0 }
   0x3   :  { %v16_v2 = vpack.c.bf16 %v15_v1, %v15_v1  ;;  %v60_v3 = vld [vmem:[%s95_s2] ss:$0 sm:$0xff] }
   0x5   :  { %58 = vmatmul.msk.bf16.vlgmr.msra.gmra.mxu0 %vm29_vm0, %v16_v2 }
  0x82   :  { %v42_v4 = vpop.f32.mrf.mxu0 }
  0x83   :  { %v43_v5 = vadd.f32 %v60_v3, %v42_v4 }
  0x85   :  { %vm46_vm1 = vcmp.gt.f32.partialorder %v43_v5, 0.0  ;;  %v47_v6 = vmul.f32 0.01, %v43_v5 }
  0x87   :  { %v48_v7 = vsel %vm46_vm1, %v43_v5, %v47_v6 }
  0x88   :  { %49 = vst [vmem:[%s96_s3] sm:$0xff] %v48_v7 }
  0x8a   :  { %v44_v8 = vpop.f32.mrf.mxu0 }

</bundles_post_ra>
